<compile_context>
chip_gen: v7x
topology: tpu7x:2x2x1
jax: 0.10.0
libtpu: 0.0.40
codegen_flags: <defaults>
</compile_context>

<pallas_src>
import functools
import math

import jax
import jax.numpy as jnp
from jax.experimental import pallas as pl
from jax.experimental.pallas import tpu as pltpu

# <= 48 MiB so the scoped limit is valid on v7x (64 MiB physical VMEM per TC).
_VMEM_LIMIT = 48 * 1024 * 1024

# Matmul tile sizes.  128x128 is safe/efficient on v5e (4x128 MXU) and fine for the
# small M/N (<=512) in this network; on v6e/v7x these could be raised to 256 to match
# the 2x256 MXU for larger problems.
_TM = 128
_TN = 128
_TK_CANDIDATES = (512, 384, 256, 128)


def _round_up(x, m):
    return ((x + m - 1) // m) * m


def _pick_tk(kp):
    for cand in _TK_CANDIDATES:
        if kp % cand == 0:
            return cand
    return 128


# ----------------------------------------------------------------------------
# Pallas kernels
# ----------------------------------------------------------------------------
def _mm_kernel(a_ref, w_ref, b_ref, o_ref, acc_ref):
    @pl.when(pl.program_id(2) == 0)
    def _():
        acc_ref[...] = jnp.zeros_like(acc_ref)

    acc_ref[...] += jnp.dot(a_ref[...], w_ref[...],
                            preferred_element_type=jnp.float32)

    @pl.when(pl.program_id(2) == pl.num_programs(2) - 1)
    def _():
        o_ref[...] = acc_ref[...] + b_ref[...]


def _mm_res_kernel(a_ref, w_ref, b_ref, r_ref, o_ref, acc_ref):
    @pl.when(pl.program_id(2) == 0)
    def _():
        acc_ref[...] = jnp.zeros_like(acc_ref)

    acc_ref[...] += jnp.dot(a_ref[...], w_ref[...],
                            preferred_element_type=jnp.float32)

    @pl.when(pl.program_id(2) == pl.num_programs(2) - 1)
    def _():
        o_ref[...] = acc_ref[...] + b_ref[...] + r_ref[...]


@functools.partial(jax.jit, static_argnames=("tm", "tn", "tk"))
def _mm_call(a, w, b, *, tm, tn, tk):
    mp, kp = a.shape
    _, np_ = w.shape
    grid = (mp // tm, np_ // tn, kp // tk)
    return pl.pallas_call(
        _mm_kernel,
        out_shape=jax.ShapeDtypeStruct((mp, np_), jnp.float32),
        grid=grid,
        in_specs=[
            pl.BlockSpec((tm, tk), lambda i, j, k: (i, k)),
            pl.BlockSpec((tk, tn), lambda i, j, k: (k, j)),
            pl.BlockSpec((1, tn), lambda i, j, k: (0, j)),
        ],
        out_specs=pl.BlockSpec((tm, tn), lambda i, j, k: (i, j)),
        scratch_shapes=[pltpu.VMEM((tm, tn), jnp.float32)],
        compiler_params=pltpu.CompilerParams(
            dimension_semantics=("parallel", "parallel", "arbitrary"),
            vmem_limit_bytes=_VMEM_LIMIT),
    )(a, w, b)


@functools.partial(jax.jit, static_argnames=("tm", "tn", "tk"))
def _mm_res_call(a, w, b, r, *, tm, tn, tk):
    mp, kp = a.shape
    _, np_ = w.shape
    grid = (mp // tm, np_ // tn, kp // tk)
    return pl.pallas_call(
        _mm_res_kernel,
        out_shape=jax.ShapeDtypeStruct((mp, np_), jnp.float32),
        grid=grid,
        in_specs=[
            pl.BlockSpec((tm, tk), lambda i, j, k: (i, k)),
            pl.BlockSpec((tk, tn), lambda i, j, k: (k, j)),
            pl.BlockSpec((1, tn), lambda i, j, k: (0, j)),
            pl.BlockSpec((tm, tn), lambda i, j, k: (i, j)),
        ],
        out_specs=pl.BlockSpec((tm, tn), lambda i, j, k: (i, j)),
        scratch_shapes=[pltpu.VMEM((tm, tn), jnp.float32)],
        compiler_params=pltpu.CompilerParams(
            dimension_semantics=("parallel", "parallel", "arbitrary"),
            vmem_limit_bytes=_VMEM_LIMIT),
    )(a, w, b, r)


def pallas_matmul(a, w, bias, residual=None):
    """out = a @ w + bias (+ residual).  a:(M,K) f32, w:(K,N) bf16/f32, bias:(N,) f32."""
    M, K = a.shape
    N = w.shape[1]

    mp = _round_up(M, 16)                 # bf16 sublane packing = 16
    tm = _TM if mp >= _TM else mp
    mp = _round_up(mp, tm)
    np_ = _round_up(N, _TN)               # lane-dense output blocks (>=128 wide)
    tn = _TN
    kp = _round_up(K, 128)
    tk = _pick_tk(kp)

    a_p = jnp.pad(a, ((0, mp - M), (0, kp - K))).astype(jnp.bfloat16)
    w_p = jnp.pad(w.astype(jnp.bfloat16), ((0, kp - K), (0, np_ - N)))
    b_p = jnp.pad(bias.reshape(1, N).astype(jnp.float32), ((0, 0), (0, np_ - N)))

    if residual is None:
        out = _mm_call(a_p, w_p, b_p, tm=tm, tn=tn, tk=tk)
    else:
        r_p = jnp.pad(residual.astype(jnp.float32),
                      ((0, mp - M), (0, np_ - N)))
        out = _mm_res_call(a_p, w_p, b_p, r_p, tm=tm, tn=tn, tk=tk)
    return out[:M, :N]


def _gn_kernel(x_ref, gamma_ref, beta_ref, o_ref, *, num_groups, inv_n, eps, silu):
    x = x_ref[0]                                   # (HW, C) f32
    C = x.shape[1]
    G = num_groups
    cpg = C // G
    # One-hot (C, G) group-membership matrix built in-kernel (no HBM input).
    ch = jax.lax.broadcasted_iota(jnp.int32, (C, G), 0)
    gr = jax.lax.broadcasted_iota(jnp.int32, (C, G), 1)
    g = (ch // cpg == gr).astype(jnp.float32)

    s = jnp.sum(x, axis=0, keepdims=True)          # (1, C)
    sq = jnp.sum(x * x, axis=0, keepdims=True)     # (1, C)
    gs = jnp.dot(s, g, preferred_element_type=jnp.float32)    # (1, G)
    gsq = jnp.dot(sq, g, preferred_element_type=jnp.float32)  # (1, G)
    mean = gs * inv_n
    var = gsq * inv_n - mean * mean
    inv = jax.lax.rsqrt(var + eps)
    dn = (((1,), (1,)), ((), ()))                  # contract the group axis against g
    mean_c = jax.lax.dot_general(mean, g, dn, preferred_element_type=jnp.float32)
    inv_c = jax.lax.dot_general(inv, g, dn, preferred_element_type=jnp.float32)
    y = (x - mean_c) * inv_c * gamma_ref[...] + beta_ref[...]
    if silu:
        y = y * pl.reciprocal(1.0 + jnp.exp(-y), approx=True)
    o_ref[0] = y


@functools.partial(jax.jit, static_argnames=("silu", "eps", "num_groups"))
def _group_norm_call(xr, gamma, beta, *, silu, eps, num_groups):
    B, HW, C = xr.shape
    inv_n = 1.0 / float(HW * (C // num_groups))
    kern = functools.partial(_gn_kernel, num_groups=num_groups,
                             inv_n=inv_n, eps=eps, silu=silu)
    return pl.pallas_call(
        kern,
        out_shape=jax.ShapeDtypeStruct((B, HW, C), jnp.float32),
        grid=(B,),
        in_specs=[
            pl.BlockSpec((1, HW, C), lambda b: (b, 0, 0)),
            pl.BlockSpec((1, C), lambda b: (0, 0)),
            pl.BlockSpec((1, C), lambda b: (0, 0)),
        ],
        out_specs=pl.BlockSpec((1, HW, C), lambda b: (b, 0, 0)),
        compiler_params=pltpu.CompilerParams(
            dimension_semantics=("parallel",),
            vmem_limit_bytes=_VMEM_LIMIT),
    )(xr, gamma, beta)


def group_norm(x, p, silu, num_groups=32, eps=1e-6):
    # x: (B, H, W, C) f32
    B, H, W, C = x.shape
    xr = x.reshape(B, H * W, C)
    out = _group_norm_call(xr, p["gamma"].reshape(1, C), p["beta"].reshape(1, C),
                           silu=silu, eps=eps, num_groups=num_groups)
    return out.reshape(B, H, W, C)


def _attn_kernel(q_ref, k_ref, v_ref, o_ref, *, scale):
    q = q_ref[0]                                   # (Lq, D)
    k = k_ref[0]                                   # (Lk, D)
    v = v_ref[0]                                   # (Lk, D)
    dn = (((1,), (1,)), ((), ()))
    s = jax.lax.dot_general(q, k, dn, preferred_element_type=jnp.float32) * scale
    s = s - jnp.max(s, axis=-1, keepdims=True)
    e = jnp.exp(s)
    p = e * pl.reciprocal(jnp.sum(e, axis=-1, keepdims=True), approx=True)
    o_ref[0] = jnp.dot(p, v, preferred_element_type=jnp.float32)


@functools.partial(jax.jit, static_argnames=("scale",))
def pallas_attention(q, k, v, *, scale):
    N, Lq, D = q.shape
    _, Lk, _ = k.shape
    kern = functools.partial(_attn_kernel, scale=scale)
    return pl.pallas_call(
        kern,
        out_shape=jax.ShapeDtypeStruct((N, Lq, D), jnp.float32),
        grid=(N,),
        in_specs=[
            pl.BlockSpec((1, Lq, D), lambda n: (n, 0, 0)),
            pl.BlockSpec((1, Lk, D), lambda n: (n, 0, 0)),
            pl.BlockSpec((1, Lk, D), lambda n: (n, 0, 0)),
        ],
        out_specs=pl.BlockSpec((1, Lq, D), lambda n: (n, 0, 0)),
        compiler_params=pltpu.CompilerParams(
            dimension_semantics=("parallel",),
            vmem_limit_bytes=_VMEM_LIMIT),
    )(q, k, v)


# ----------------------------------------------------------------------------
# Layer wrappers (glue: im2col / pad / upsample / reshapes stay in JAX)
# ----------------------------------------------------------------------------
def conv2d(x, p, stride=1, padding=1, residual=None):
    # x: (B, H, W, Cin) f32; p["w"]: (kh, kw, Cin, Cout) HWIO (bf16)
    B, H, W, Cin = x.shape
    kh, kw, _, Cout = p["w"].shape
    if kh == 1 and kw == 1 and stride == 1:
        a = x.reshape(B * H * W, Cin)
        Ho, Wo = H, W
    else:
        xp = jnp.pad(x, ((0, 0), (padding, padding), (padding, padding), (0, 0))) \
            if padding > 0 else x
        Hp, Wp = xp.shape[1], xp.shape[2]
        Ho = (Hp - kh) // stride + 1
        Wo = (Wp - kw) // stride + 1
        cols = []
        for i in range(kh):
            for j in range(kw):
                cols.append(xp[:, i:i + stride * Ho:stride, j:j + stride * Wo:stride, :])
        # TODO(synk): fold the kh*kw taps into the K grid axis (Element-offset
        # index_map on the padded NHWC input) to avoid the 9x im2col HBM buffer at
        # large resolutions; with the tiled-K matmul the concatenated A at least is
        # never resident as a single VMEM block.
        a = jnp.concatenate(cols, axis=-1).reshape(B * Ho * Wo, kh * kw * Cin)
    wmat = p["w"].reshape(kh * kw * Cin, Cout)
    r = None if residual is None else residual.reshape(B * Ho * Wo, Cout)
    out = pallas_matmul(a, wmat, p["b"], r)
    return out.reshape(B, Ho, Wo, Cout)


def linear(x, p, residual=None):
    shp = x.shape
    dout = p["w"].shape[1]
    a = x.reshape(-1, shp[-1])
    r = None if residual is None else residual.reshape(-1, dout)
    out = pallas_matmul(a, p["w"], p["b"], r)
    return out.reshape(shp[:-1] + (dout,))


def pad_br(x):
    # torch F.pad(x, (0,1,0,1)): pad right/bottom by one (NHWC -> H,W axes)
    return jnp.pad(x, ((0, 0), (0, 1), (0, 1), (0, 0)))


def upsample2(x):
    return jnp.repeat(jnp.repeat(x, 2, axis=1), 2, axis=2)


def resnet_block(x, p):
    if "resil" in p:
        res = conv2d(x, p["resil"], stride=1, padding=0)
    else:
        res = x
    h = group_norm(x, p["gn1"], silu=True)
    h = conv2d(h, p["conv1"], stride=1, padding=1)
    h = group_norm(h, p["gn2"], silu=True)
    h = conv2d(h, p["conv2"], stride=1, padding=1, residual=res)   # fused "+ res"
    return h


def self_attention(x, p):
    B, H, W, C = x.shape
    res = x.reshape(B, H * W, C)
    h = group_norm(x, p["gn"], silu=False).reshape(B * H * W, C)
    # Fused q/k/v projection: one matmul against a (C, 3C) weight cuts activation
    # HBM reads and launch overhead by 3x.
    wqkv = jnp.concatenate([p["wq"]["w"], p["wk"]["w"], p["wv"]["w"]], axis=1)
    bqkv = jnp.concatenate([p["wq"]["b"], p["wk"]["b"], p["wv"]["b"]], axis=0)
    qkv = pallas_matmul(h, wqkv, bqkv).reshape(B, H * W, 3 * C)
    q = qkv[:, :, :C]
    k = qkv[:, :, C:2 * C]
    v = qkv[:, :, 2 * C:]
    a = pallas_attention(q, k, v, scale=1.0 / math.sqrt(512.0))
    a = linear(a, p["out"], residual=res)                          # fused "+ res"
    return a.reshape(B, H, W, C)


def cross_attention(q_in, kv_in, p, heads=8, dim_q=16):
    # Perf: head_dim = dim_q//heads = 2 and L is tiny (h/8 * w/8); per the perf review
    # this block stays in plain XLA — a Pallas launch per (B*heads, L, 2) block would be
    # ~1.5% lane utilization and pure per-grid-step overhead on every TPU generation.
    B, Lq, _ = q_in.shape
    Lk = kv_in.shape[1]
    hd = dim_q // heads
    q = q_in @ p["wq"]["w"]
    k = kv_in @ p["wk"]["w"]
    v = kv_in @ p["wv"]["w"]

    def mh(t, L):
        return t.reshape(B, L, heads, hd).transpose(0, 2, 1, 3)

    qh, kh, vh = mh(q, Lq), mh(k, Lk), mh(v, Lk)
    s = jnp.einsum("bhqd,bhkd->bhqk", qh, kh) * (hd ** -0.5)
    attn = jax.nn.softmax(s, axis=-1)
    a = jnp.einsum("bhqk,bhkd->bhqd", attn, vh)
    a = a.transpose(0, 2, 1, 3).reshape(B, Lq, dim_q)
    return a @ p["out"]["w"] + p["out"]["b"]


def encoder_forward(x, p):
    h = conv2d(x, p["conv_in"], stride=1, padding=1)
    for st in ("down1", "down2", "down3"):
        sp = p[st]
        h = resnet_block(h, sp["rb1"])
        h = resnet_block(h, sp["rb2"])
        h = conv2d(pad_br(h), sp["down"], stride=2, padding=0)
    h = resnet_block(h, p["mid1_rb1"])
    h = resnet_block(h, p["mid1_rb2"])
    h = resnet_block(h, p["mid2_rb1"])
    h = self_attention(h, p["mid2_sa"])
    h = resnet_block(h, p["mid2_rb2"])
    h = group_norm(h, p["final_gn"], silu=True)
    h = conv2d(h, p["final_conv"], stride=1, padding=1)
    h = conv2d(h, p["conv_out"], stride=1, padding=0)
    return h


def decoder_forward(h, p):
    h = conv2d(h, p["conv_in1"], stride=1, padding=0)
    h = conv2d(h, p["conv_in2"], stride=1, padding=1)
    h = resnet_block(h, p["mid_rb1"])
    h = self_attention(h, p["mid_sa"])
    h = resnet_block(h, p["mid_rb2"])
    for st in ("up1", "up2", "up3"):
        sp = p[st]
        for rb in sp["rbs"]:
            h = resnet_block(h, rb)
        h = upsample2(h)
        h = conv2d(h, sp["conv"], stride=1, padding=1)
    for rb in p["tail_rbs"]:
        h = resnet_block(h, rb)
    h = group_norm(h, p["final_gn"], silu=True)
    h = conv2d(h, p["final_conv"], stride=1, padding=1)
    return h


def vae_forward(params, x, y):
    # x, y: NCHW (B, 1, H, W) float32
    xh = jnp.transpose(x, (0, 2, 3, 1))
    yh = jnp.transpose(y, (0, 2, 3, 1))
    hidden = encoder_forward(xh, params["encoder"])    # (B, H/8, W/8, 1)
    hidden2 = encoder_forward(yh, params["encoder2"])  # (B, H/8, W/8, 16)
    B, h8, w8, _ = hidden2.shape
    # TODO(synk): the original PyTorch CrossAttention expects 3-D (b, len, dim) inputs but
    # the encoders emit 4-D maps whose feature dims do not match CrossAttention(16, 1); we
    # use the evidently-intended mapping: 16-ch latent -> query tokens (dim 16),
    # 1-ch latent -> kv tokens (dim 1).
    q_tok = hidden2.reshape(B, h8 * w8, 16)
    kv_tok = hidden.reshape(B, h8 * w8, 1)
    h = cross_attention(q_tok, kv_tok, params["atten"])
    h = h.reshape(B, h8, w8, 16)
    out = decoder_forward(h, params["decoder"])        # (B, H, W, 1)
    return jnp.transpose(out, (0, 3, 1, 2))            # back to NCHW


# ----------------------------------------------------------------------------
# Deterministic parameter initialization (shapes from the PyTorch __init__)
# Weights are stored in bfloat16 (MXU-native on v6e/v7x, halves HBM weight traffic);
# biases / norm params stay float32.
# ----------------------------------------------------------------------------
class KeyGen:
    def __init__(self, seed):
        self._key = jax.random.PRNGKey(seed)
        self._i = 0

    def __call__(self):
        self._i += 1
        return jax.random.fold_in(self._key, self._i)


def init_conv(kg, cin, cout, k):
    w = jax.random.normal(kg(), (k, k, cin, cout), jnp.float32) / math.sqrt(cin * k * k)
    b = jax.random.normal(kg(), (cout,), jnp.float32) * 0.01
    return {"w": w.astype(jnp.bfloat16), "b": b}


def init_linear(kg, din, dout, bias=True):
    w = jax.random.normal(kg(), (din, dout), jnp.float32) / math.sqrt(din)
    b = (jax.random.normal(kg(), (dout,), jnp.float32) * 0.01
         if bias else jnp.zeros((dout,), jnp.float32))
    return {"w": w.astype(jnp.bfloat16), "b": b}


def init_gn(c):
    return {"gamma": jnp.ones((c,), jnp.float32), "beta": jnp.zeros((c,), jnp.float32)}


def init_rb(kg, din, dout):
    p = {"gn1": init_gn(din), "conv1": init_conv(kg, din, dout, 3),
         "gn2": init_gn(dout), "conv2": init_conv(kg, dout, dout, 3)}
    if din != dout:
        p["resil"] = init_conv(kg, din, dout, 1)
    return p


def init_sa(kg):
    return {"gn": init_gn(512),
            "wq": init_linear(kg, 512, 512), "wk": init_linear(kg, 512, 512),
            "wv": init_linear(kg, 512, 512), "out": init_linear(kg, 512, 512)}


def init_encoder(kg, cout_final):
    p = {"conv_in": init_conv(kg, 1, 128, 3)}
    for idx, (ci, co) in enumerate([(128, 128), (128, 256), (256, 512)], start=1):
        p[f"down{idx}"] = {"rb1": init_rb(kg, ci, co), "rb2": init_rb(kg, co, co),
                           "down": init_conv(kg, co, co, 3)}
    p["mid1_rb1"] = init_rb(kg, 512, 512)
    p["mid1_rb2"] = init_rb(kg, 512, 512)
    p["mid2_rb1"] = init_rb(kg, 512, 512)
    p["mid2_sa"] = init_sa(kg)
    p["mid2_rb2"] = init_rb(kg, 512, 512)
    p["final_gn"] = init_gn(512)
    p["final_conv"] = init_conv(kg, 512, cout_final, 3)
    p["conv_out"] = init_conv(kg, cout_final, cout_final, 1)
    return p


def init_cross_attn(kg):
    return {"wq": init_linear(kg, 16, 16, bias=False),
            "wk": init_linear(kg, 1, 16, bias=False),
            "wv": init_linear(kg, 1, 16, bias=False),
            "out": init_linear(kg, 16, 16, bias=True)}


def init_decoder(kg):
    p = {"conv_in1": init_conv(kg, 16, 16, 1),
         "conv_in2": init_conv(kg, 16, 512, 3),
         "mid_rb1": init_rb(kg, 512, 512),
         "mid_sa": init_sa(kg),
         "mid_rb2": init_rb(kg, 512, 512)}
    p["up1"] = {"rbs": [init_rb(kg, 512, 512) for _ in range(3)],
                "conv": init_conv(kg, 512, 512, 3)}
    p["up2"] = {"rbs": [init_rb(kg, 512, 512) for _ in range(3)],
                "conv": init_conv(kg, 512, 512, 3)}
    p["up3"] = {"rbs": [init_rb(kg, 512, 256), init_rb(kg, 256, 256), init_rb(kg, 256, 256)],
                "conv": init_conv(kg, 256, 256, 3)}
    p["tail_rbs"] = [init_rb(kg, 256, 128), init_rb(kg, 128, 128), init_rb(kg, 128, 128)]
    p["final_gn"] = init_gn(128)
    p["final_conv"] = init_conv(kg, 128, 1, 3)
    return p


# ----------------------------------------------------------------------------
if __name__ == "__main__":
    kg = KeyGen(0)
    params = {
        "encoder": init_encoder(kg, 1),
        "encoder2": init_encoder(kg, 16),
        "atten": init_cross_attn(kg),
        "decoder": init_decoder(kg),
    }

    kx, ky = jax.random.split(jax.random.PRNGKey(0))
    x = jax.random.normal(kx, (2, 1, 16, 16), jnp.float32)   # NCHW, like the PyTorch module
    y = jax.random.normal(ky, (2, 1, 16, 16), jnp.float32)

    out = vae_forward(params, x, y)
    out = jax.block_until_ready(out)

    assert out.shape == (2, 1, 16, 16), out.shape
    assert out.dtype == jnp.float32
    assert bool(jnp.all(jnp.isfinite(out)))
    print("KERNEL_OK")
</pallas_src>

<mosaic_0001>
module attributes {stable_mosaic.version = 11 : i64} {
  func.func @_mm_kernel(%arg0: i32, %arg1: i32, %arg2: i32, %arg3: memref<128x128xbf16, #tpu.memory_space<vmem>>, %arg4: memref<128x128xbf16, #tpu.memory_space<vmem>>, %arg5: memref<1x128xf32, #tpu.memory_space<vmem>>, %arg6: memref<128x128xf32, #tpu.memory_space<vmem>>, %arg7: memref<128x128xf32, #tpu.memory_space<vmem>>) attributes {dimension_semantics = [#tpu.dimension_semantics<parallel>, #tpu.dimension_semantics<parallel>, #tpu.dimension_semantics<arbitrary>], iteration_bounds = array<i64: 4, 1, 1>, scalar_prefetch = 0 : i64, scratch_operands = 1 : i64, tpu.core_type = #tpu.core_type<tc>, window_params = [{transform_indices = @transform_0, window_bounds = array<i64: 128, 128>}, {transform_indices = @transform_1, window_bounds = array<i64: 128, 128>}, {transform_indices = @transform_2, window_bounds = array<i64: 1, 128>}, {transform_indices = @transform_3, window_bounds = array<i64: 128, 128>}]} {
    %c0_i32 = arith.constant 0 : i32
    %0 = arith.cmpi eq, %arg2, %c0_i32 : i32
    %1 = arith.extui %0 : i1 to i32
    %c0_i32_0 = arith.constant 0 : i32
    %2 = arith.cmpi ne, %1, %c0_i32_0 : i32
    scf.if %2 {
      %cst_10 = arith.constant 0.000000e+00 : f32
      %12 = vector.broadcast %cst_10 : f32 to vector<128x128xf32>
      %c0_11 = arith.constant 0 : index
      %c0_12 = arith.constant 0 : index
      %13 = vector.load %arg7[%c0_11, %c0_12] : memref<128x128xf32, #tpu.memory_space<vmem>>, vector<128x128xf32>
      tpu.vector_store %arg7[%c0_11, %c0_12], %12 {strides = array<i32>} : memref<128x128xf32, #tpu.memory_space<vmem>>, vector<128x128xf32>,
    } else {
    }
    %c0 = arith.constant 0 : index
    %c0_1 = arith.constant 0 : index
    %3 = vector.load %arg7[%c0, %c0_1] : memref<128x128xf32, #tpu.memory_space<vmem>>, vector<128x128xf32>
    %c0_2 = arith.constant 0 : index
    %c0_3 = arith.constant 0 : index
    %4 = vector.load %arg3[%c0_2, %c0_3] : memref<128x128xbf16, #tpu.memory_space<vmem>>, vector<128x128xbf16>
    %c0_4 = arith.constant 0 : index
    %c0_5 = arith.constant 0 : index
    %5 = vector.load %arg4[%c0_4, %c0_5] : memref<128x128xbf16, #tpu.memory_space<vmem>>, vector<128x128xbf16>
    %cst = arith.constant dense<0.000000e+00> : vector<128x128xf32>
    %6 = tpu.matmul %4, %5, %cst {dimension_numbers = #tpu.dot_dimension_numbers<[1], [0], [0], [1], [0, 0, 1, 1], [], []>} : vector<128x128xbf16>, vector<128x128xbf16>, vector<128x128xf32> -> vector<128x128xf32>
    %7 = arith.addf %3, %6 : vector<128x128xf32>
    %c0_6 = arith.constant 0 : index
    %c0_7 = arith.constant 0 : index
    %8 = vector.load %arg7[%c0_6, %c0_7] : memref<128x128xf32, #tpu.memory_space<vmem>>, vector<128x128xf32>
    tpu.vector_store %arg7[%c0_6, %c0_7], %7 {strides = array<i32>} : memref<128x128xf32, #tpu.memory_space<vmem>>, vector<128x128xf32>,
    %c0_i32_8 = arith.constant 0 : i32
    %9 = arith.cmpi eq, %arg2, %c0_i32_8 : i32
    %10 = arith.extui %9 : i1 to i32
    %c0_i32_9 = arith.constant 0 : i32
    %11 = arith.cmpi ne, %10, %c0_i32_9 : i32
    scf.if %11 {
      %c0_10 = arith.constant 0 : index
      %c0_11 = arith.constant 0 : index
      %12 = vector.load %arg7[%c0_10, %c0_11] : memref<128x128xf32, #tpu.memory_space<vmem>>, vector<128x128xf32>
      %c0_12 = arith.constant 0 : index
      %c0_13 = arith.constant 0 : index
      %13 = vector.load %arg5[%c0_12, %c0_13] : memref<1x128xf32, #tpu.memory_space<vmem>>, vector<1x128xf32>
      %14 = vector.broadcast %13 : vector<1x128xf32> to vector<128x128xf32>
      %15 = arith.addf %12, %14 : vector<128x128xf32>
      %c0_14 = arith.constant 0 : index
      %c0_15 = arith.constant 0 : index
      %16 = vector.load %arg6[%c0_14, %c0_15] : memref<128x128xf32, #tpu.memory_space<vmem>>, vector<128x128xf32>
      tpu.vector_store %arg6[%c0_14, %c0_15], %15 {strides = array<i32>} : memref<128x128xf32, #tpu.memory_space<vmem>>, vector<128x128xf32>,
    } else {
    }
    return
  }
  func.func @transform_0(%arg0: i32, %arg1: i32, %arg2: i32) -> (i32, i32) {
    %c0_i32 = arith.constant 0 : i32
    return %arg0, %arg2 : i32, i32
  }
  func.func @transform_1(%arg0: i32, %arg1: i32, %arg2: i32) -> (i32, i32) {
    %c0_i32 = arith.constant 0 : i32
    return %arg2, %arg1 : i32, i32
  }
  func.func @transform_2(%arg0: i32, %arg1: i32, %arg2: i32) -> (i32, i32) {
    %c0_i32 = arith.constant 0 : i32
    %c0_i32_0 = arith.constant 0 : i32
    return %c0_i32, %arg1 : i32, i32
  }
  func.func @transform_3(%arg0: i32, %arg1: i32, %arg2: i32) -> (i32, i32) {
    %c0_i32 = arith.constant 0 : i32
    return %arg0, %arg1 : i32, i32
  }
}

</mosaic_0001>

<bundles_post_ra>
// kernel: _mm_call.1
= control target key start
LH: loop header
LB: loop body
LE: loop exit
PB: predicated region body
PF: predicated region fallthrough
CT: control target
= control target key end

     0   :  { %8 = vsyncpa [#allocation4], 0  ;;  %s1360_s0 = inlined_call_operand.hbm [shape: bf16[512,128], index: 0, kind: input, shape index: {}]   ;;  %s1361_s1 = inlined_call_operand.hbm [shape: bf16[128,128], index: 1, kind: input, shape index: {}]   ;;  %s1362_s2 = inlined_call_operand.vmem [shape: f32[1,128], index: 2, kind: input, shape index: {}]   ;;  %s1363_s3 = inlined_call_operand.hbm [shape: f32[512,128], index: 3, kind: output, shape index: {}]  }
   0x1   :  { %10 = vsyncpa [#allocation4 + $0x1], 0 }
   0x2   :  { %11 = vsyncpa [#allocation7], 0 }
   0x3   :  { %12 = vsyncpa [#allocation5], 0 }
   0x4   :  { %14 = vsyncpa [#allocation5 + $0x1], 0  ;;  %s1104_s12 = smov 0   ;;  %s1106_s13 = smov 0  }
   0x5   :  { %s1108_s14 = smov 0   ;;  %s1110_s15 = smov 0  }
   0x6   :  { %s1112_s16 = smov 0   ;;  %s1114_s17 = smov 0  }
   0x7 LB: > { %s737_s18 = sadd.s32 4294967295, %s1075_s17   ;;  %s738_s19 = sadd.s32 4294967294, %s1075_s17   ;;  %s1075_s17 = sphi %s1114_s17, %s20_s17   ;;  %s1071_s16 = sphi %s1112_s16, %s1386_s16   ;;  %s1067_s15 = sphi %s1110_s15, %s1385_s15   ;;  %s1063_s14 = sphi %s1108_s14, %s1384_s14   ;;  %s1059_s13 = sphi %s1106_s13, %s1383_s13   ;;  %s1055_s12 = sphi %s1104_s12, %s1382_s12  }
   0x8   : > { %p61_p0 = scmp.ne.s32.totalorder %s1059_s13, %s1055_s12  ;;  %p1138_p1 = scmp.eq.s32.totalorder %s737_s18, 0 }
   0x9   : > { %p1142_p2 = scmp.eq.s32.totalorder %s737_s18, 3  ;;  %p147_p3 = scmp.eq.s32.totalorder %s738_s19, 3 }
   0xa   : > { %s1368_s20 = scalar_select %p1138_p1, 1, 0 }
   0xb   : > { %s1369_s21 = scalar_select %p1142_p2, 1, 0 }
   0xc   : > { %p1148_p4 = por %p1138_p1, %p61_p0  ;;  %p739_p5 = scmp.ge.s32.totalorder %s1075_s17, 1 }
   0xd   : > { %p1153_p6 = por %p147_p3, %p61_p0  ;;  %p154_p7 = scmp.lt.s32.totalorder %s1075_s17, 5 }
   0xe   : > { %s1370_s22 = scalar_select %p1148_p4, 1, 0 }
   0xf   : > { %s1371_s23 = scalar_select %p1153_p6, 1, 0 }
  0x10   : > { %p1158_p8 = pnand %p739_p5, %p154_p7  ;;  %s1077_s25 = smov [#allocation6]  }
  0x11   : > { %s170_s26 = sshll.u32 %s1077_s25, 4  ;;  %s39_s28 = sadd.s32 1, %s1071_s16  ;;  %s171_s26 = int_to_ptr.vmem [resolvable:$true] %s170_s26 }
  0x12   : > { %s1372_s24 = scalar_select %p1158_p8, 1, 0 }
  0x13   : > { %p846_p9 = pneg %p1158_p8  ;;  %s931_s4 = scalar_lea.hbm %s1361_s1, 1024 }
  0x14   : > { %p932_p11 = scmp.ne.s32.totalorder %s1361_s1, %s931_s4  ;;  %p938_p3 = scmp.lt.u32.totalorder %s931_s4, %s1361_s1 }
  0x15   : > { %p1166_p10 = pnand %p846_p9, %p1138_p1 }
  0x17   : > { %p933_p12 = pneg %p1166_p10 }
  0x19   : > { %p934_p13 = pnand %p933_p12, %p932_p11 }
  0x1b   : > { %p935_p0 = pneg %p934_p13 }
  0x1d   : > { %p940_p5 = pnand %p938_p3, %p935_p0 }
  0x1f   : > { %943 = shalt.err (!%p940_p5)
}
  0x20   : > { %s944_s9 = scalar_lea.vmem %s171_s26, 1024  ;;  %p952_p1 = scmp.lt.s32.totalorder %s171_s26, %s171_s26 }
  0x21   : > { %p945_p7 = scmp.ne.s32.totalorder %s171_s26, %s944_s9  ;;  %p953_p4 = scmp.lt.s32.totalorder %s944_s9, %s944_s9 }
  0x23   : > { %p947_p9 = pnand %p945_p7, %p933_p12  ;;  %p954_p8 = por %p953_p4, %p952_p1 }
  0x25   : > { %p948_p6 = pneg %p947_p9 }
  0x27   : > { %p955_p2 = pnand %p954_p8, %p948_p6 }
  0x29   : > { %958 = shalt.err (!%p955_p2)
}
  0x2a   : > { %s1078_s10 = smov 64   ;;  %s1079_s11 = smov 4  }
  0x2b   : > { %849 = dma.hbm_to_vmem [thread:$0]  (!%p1166_p10), %s1361_s1, 1024, %s171_s26, [#allocation7], %s1078_s10, %s1078_s10, %s1079_s11  }
  0x2c   : > { %p41_p1 = scmp.ge.s32.totalorder %s39_s28, 4  ;;  %s48_s25 = sadd.s32 1, %s1063_s14 }
  0x2d   : > { %p55_p2 = scmp.ne.s32.totalorder %s1063_s14, %s1059_s13  ;;  %p56_p4 = scmp.eq.s32.totalorder %s1075_s17, 0 }
  0x2e   : > { %s1388_s28 = smov (%p41_p1, %s39_s28), 0  ;;  %p1375_p8 = scmp.ne.s32.totalorder %s1369_s21, 0 }
  0x2f   : > { %p1196_p6 = por %p56_p4, %p55_p2  ;;  %s43_s30 = ssub.s32 %s1071_s16, %s1388_s28 }
  0x30   : > { %p1202_p11 = por %p1375_p8, %p55_p2  ;;  %p859_p12 = scmp.lt.s32.totalorder %s1075_s17, 4 }
  0x31   : > { %p46_p10 = scmp.eq.s32.totalorder %s43_s30, 0  ;;  %s190_s26 = sand.u32 1, %s1063_s14  }
  0x32   : > { %s743_s4 = sshll.u32 %s190_s26, 6  ;;  %s772_s6 = sshll.u32 %s1071_s16, 10 }
  0x33   : > { %s1211_s5 = scalar_select %p46_p10, %s1063_s14, %s48_s25  }
  0x34   : > { %s1217_s9 = scalar_lea.hbm %s1360_s0, %s772_s6  ;;  %s194_s21 = scalar_lea.vmem [#allocation3], %s743_s4 }
  0x35   : > { %s202_s18 = sshll.u32 %s194_s21, 4  ;;  %p1223_p13 = pnand %p859_p12, %p1196_p6  ;;  %s1219_s18 = int_to_ptr.vmem [resolvable:$true] %s202_s18 }
  0x36   : > { %s1227_s25 = scalar_lea.sflag [#allocation4], %s190_s26  ;;  %s959_s30 = scalar_lea.hbm %s1217_s9, 1024 }
  0x37   : > { %p960_p0 = scmp.ne.s32.totalorder %s1217_s9, %s959_s30  ;;  %p961_p3 = pneg %p1223_p13 }
  0x38   : > { %s964_s29 = scalar_lea.hbm %s1360_s0, 4096  ;;  %p965_p9 = scmp.lt.u32.totalorder %s1217_s9, %s1360_s0 }
  0x39   : > { %p962_p5 = pnand %p961_p3, %p960_p0  ;;  %p966_p1 = scmp.lt.u32.totalorder %s964_s29, %s959_s30 }
  0x3a   : > { %p968_p4 = scmp.lt.u32.totalorder %s959_s30, %s1217_s9 }
  0x3b   : > { %p963_p7 = pneg %p962_p5  ;;  %p967_p2 = por %p966_p1, %p965_p9 }
  0x3d   : > { %p969_p6 = por %p968_p4, %p967_p2 }
  0x3f   : > { %p970_p8 = pnand %p969_p6, %p963_p7 }
  0x41   : > { %973 = shalt.err (!%p970_p8)
}
  0x42   : > { %s974_s26 = scalar_lea.vmem %s1219_s18, 1024  ;;  %s1080_s21 = smov [#allocation3]  }
  0x43   : > { %p975_p12 = scmp.ne.s32.totalorder %s1219_s18, %s974_s26  ;;  %s979_s4 = sshll.u32 %s1080_s21, 4  ;;  %s980_s4 = int_to_ptr.vmem [resolvable:$false] %s979_s4 }
  0x44   : > { %s981_s6 = scalar_lea.vmem %s980_s4, 2048  ;;  %p982_p5 = scmp.lt.s32.totalorder %s1219_s18, %s980_s4 }
  0x45   : > { %p977_p10 = pnand %p975_p12, %p961_p3  ;;  %p983_p9 = scmp.lt.s32.totalorder %s981_s6, %s974_s26 }
  0x47   : > { %p978_p0 = pneg %p977_p10  ;;  %p984_p1 = por %p983_p9, %p982_p5 }
  0x49   : > { %p985_p2 = pnand %p984_p1, %p978_p0 }
  0x4b   : > { %988 = shalt.err (!%p985_p2)
}
  0x4c   : > { %853 = dma.hbm_to_vmem [thread:$0]  (!%p1223_p13), %s1217_s9, 1024, %s1219_s18, %s1227_s25, %s1078_s10, %s1078_s10, %s1079_s11  }
  0x4d   : > { %p1378_p3 = scmp.ne.s32.totalorder %s1372_s24, 0 }
  0x4e   : > { %s1261_s30 = sand.u32 (!%p1378_p3), 1, %s1059_s13   ;;  %p1379_p7 = scmp.ne.s32.totalorder (!%p1378_p3), %s1370_s22, 0 }
  0x4f   : > { %214 = sbr.rel (%p1378_p3) target bundleno = 363 (0x16b), region = 32  ;;  %s747_s29 = sshll.u32 (!%p1378_p3), %s1261_s30, 6 }
  0x50   : > { %s217_s7 = scalar_lea.sflag (!%p1378_p3), [#allocation4], %s1261_s30  ;;  %s1265_s8 = scalar_lea.vmem (!%p1378_p3), [#allocation3], %s747_s29 }
  0x56   : > { %1042 = dma.done.wait (%p1379_p7), %s217_s7, 1024  }
  0x57   : > { %1044 = vsyncadd (%p1379_p7), %s217_s7, 4294966272  ;;  %p1380_p13 = scmp.ne.s32.totalorder %s1368_s20, 0 }
  0x59   : > { %1046 = dma.done.wait (%p1380_p13), [#allocation7], 1024  }
  0x5a   : > { %1048 = vsyncadd (%p1380_p13), [#allocation7], 4294966272  ;;  %v915_v0 = vld [vmem:[#allocation6] sm:$0xff]   ;;  %v916_v1 = vld [vmem:[#allocation6 + $0x8] sm:$0xff]   ;;  %s749_s20 = sshll.u32 %s1261_s30, 7  ;;  %s773_s11 = sshll.u32 %s1067_s15, 11 }
  0x5b   : > { %790 = vmatprep.subr.bf16.mxu0 %v915_v0  ;;  %822 = vmatprep.subr.bf16.mxu1 %v915_v0  ;;  %v917_v2 = vld [vmem:[#allocation6 + $0x10] sm:$0xff]   ;;  %v918_v3 = vld [vmem:[#allocation6 + $0x18] sm:$0xff]   ;;  %v923_v4 = vld [vmem:[%s1265_s8] sm:$0xff]   ;;  %s1287_s10 = scalar_lea.vmem [#allocation8], %s749_s20  ;;  %s1304_s19 = scalar_lea.hbm %s1363_s3, %s773_s11 }
  0x5c   : > { %791 = vmatpush3.bf16.msra.mxu0 %v915_v0  ;;  %830 = vmatpush3.bf16.msra.mxu1 %v915_v0  ;;  %v924_v5 = vld [vmem:[%s1265_s8 + $0x20] sm:$0xff]   ;;  %v920_v7 = vld [vmem:[#allocation6 + $0x28] sm:$0xff]   ;;  %v921_v8 = vld [vmem:[#allocation6 + $0x30] sm:$0xff]   ;;  %s623_s9 = sshll.u32 %s1287_s10, 4  ;;  %s609_s25 = scalar_lea.sflag [#allocation5], %s1261_s30  ;;  %s1306_s9 = int_to_ptr.vmem [resolvable:$true] %s623_s9 }
  0x5d   : > { %792 = vmatprep.subr.bf16.mxu0 %v916_v1  ;;  %823 = vmatprep.subr.bf16.mxu1 %v916_v1  ;;  %v919_v6 = vld [vmem:[#allocation6 + $0x20] sm:$0xff]   ;;  %v922_v9 = vld [vmem:[#allocation6 + $0x38] sm:$0xff]   ;;  %v925_v10 = vld [vmem:[%s1265_s8 + $0x8] sm:$0xff]   ;;  %s989_s26 = scalar_lea.vmem %s1306_s9, 2048  ;;  %s1081_s21 = smov [#allocation8]  }
  0x5e   : > { %806 = vmatprep.mubr.bf16.mxu0 %v923_v4  ;;  %814 = vmatprep.mubr.bf16.mxu1 %v924_v5  ;;  %v926_v11 = vld [vmem:[%s1265_s8 + $0x28] sm:$0xff]   ;;  %v927_v12 = vld [vmem:[%s1265_s8 + $0x10] sm:$0xff]   ;;  %v929_v14 = vld [vmem:[%s1265_s8 + $0x18] sm:$0xff]   ;;  %p990_p4 = scmp.ne.s32.totalorder %s1306_s9, %s989_s26  ;;  %s993_s4 = sshll.u32 %s1081_s21, 4  ;;  %s994_s4 = int_to_ptr.vmem [resolvable:$false] %s993_s4 }
  0x5f   : > { %v928_v13 = vld [vmem:[%s1265_s8 + $0x30] sm:$0xff]   ;;  %v930_v15 = vld [vmem:[%s1265_s8 + $0x38] sm:$0xff]   ;;  %v766_v16 = vld [vmem:[%s1362_s2] ss:$0 sm:$0xff]  ;;  %s995_s6 = scalar_lea.vmem %s994_s4, 4096  ;;  %p996_p12 = scmp.lt.s32.totalorder %s1306_s9, %s994_s4 }
  0x60   : > { %793 = vmatpush3.bf16.msra.mxu0 %v916_v1  ;;  %831 = vmatpush3.bf16.msra.mxu1 %v916_v1  ;;  %p991_p6 = pnand %p990_p4, %p1202_p11  ;;  %p997_p10 = scmp.lt.s32.totalorder %s995_s6, %s989_s26 }
  0x61   : > { %794 = vmatprep.subr.bf16.mxu0 %v917_v2  ;;  %824 = vmatprep.subr.bf16.mxu1 %v917_v2 }
  0x62   : > { %p992_p8 = pneg %p991_p6  ;;  %p998_p0 = por %p997_p10, %p996_p12 }
  0x64   : > { %795 = vmatpush3.bf16.msra.mxu0 %v917_v2  ;;  %832 = vmatpush3.bf16.msra.mxu1 %v917_v2  ;;  %p999_p5 = pnand %p998_p0, %p992_p8 }
  0x65   : > { %796 = vmatprep.subr.bf16.mxu0 %v918_v3  ;;  %825 = vmatprep.subr.bf16.mxu1 %v918_v3 }
  0x68   : > { %797 = vmatpush3.bf16.msra.mxu0 %v918_v3  ;;  %833 = vmatpush3.bf16.msra.mxu1 %v918_v3 }
  0x69   : > { %798 = vmatprep.subr.bf16.mxu0 %v919_v6  ;;  %826 = vmatprep.subr.bf16.mxu1 %v919_v6 }
  0x6c   : > { %799 = vmatpush3.bf16.msra.mxu0 %v919_v6  ;;  %834 = vmatpush3.bf16.msra.mxu1 %v919_v6 }
  0x6d   : > { %800 = vmatprep.subr.bf16.mxu0 %v920_v7  ;;  %827 = vmatprep.subr.bf16.mxu1 %v920_v7 }
  0x70   : > { %801 = vmatpush3.bf16.msra.mxu0 %v920_v7  ;;  %835 = vmatpush3.bf16.msra.mxu1 %v920_v7 }
  0x71   : > { %802 = vmatprep.subr.bf16.mxu0 %v921_v8  ;;  %828 = vmatprep.subr.bf16.mxu1 %v921_v8 }
  0x74   : > { %803 = vmatpush3.bf16.msra.mxu0 %v921_v8  ;;  %836 = vmatpush3.bf16.msra.mxu1 %v921_v8 }
  0x75   : > { %804 = vmatprep.subr.bf16.mxu0 %v922_v9  ;;  %829 = vmatprep.subr.bf16.mxu1 %v922_v9 }
  0x78   : > { %805 = vmatpush3.bf16.msra.mxu0 %v922_v9  ;;  %837 = vmatpush3.bf16.msra.mxu1 %v922_v9 }
  0x7b   : > { %807 = vmatmul.mubr.bf16.vlgmr.msra.gmra.mrb[0].mxu0 %v925_v10  ;;  %815 = vmatmul.mubr.bf16.vlgmr.msra.gmra.mrb[0].mxu1 %v926_v11 }
  0x7c   : > { %810 = vmatprep.mubr.bf16.mxu0 %v927_v12  ;;  %818 = vmatprep.mubr.bf16.mxu1 %v928_v13 }
  0x83   : > { %811 = vmatmul.mubr.bf16.gmra.mrb[4].mxu0 %v929_v14  ;;  %819 = vmatmul.mubr.bf16.gmra.mrb[4].mxu1 %v930_v15 }
 0x14e   : > { %v808_v17 = vpop.f32.mrb[0].mxu0  ;;  %v816_v18 = vpop.f32.mrb[0].mxu1 }
 0x14f   : > { %v578_v19 = vadd.f32 %v808_v17, %v766_v16  ;;  %v586_v20 = vadd.f32 %v816_v18, %v766_v16  ;;  %v455_v21 = vpop.f32.mrb[1].mxu0  ;;  %v487_v22 = vpop.f32.mrb[1].mxu1 }
 0x150   : > { %v576_v23 = vadd.f32 %v766_v16, %v455_v21  ;;  %v584_v24 = vadd.f32 %v766_v16, %v487_v22  ;;  %v809_v25 = vpop.f32.mrb[2].mxu0  ;;  %v817_v26 = vpop.f32.mrb[2].mxu1 }
 0x151   : > { %594 = vst [vmem:[%s1287_s10 + $0x10] sm:$0xff] %v578_v19  ;;  %602 = vst [vmem:[%s1287_s10 + $0x50] sm:$0xff] %v586_v20  ;;  %v579_v27 = vadd.f32 %v809_v25, %v766_v16  ;;  %v587_v28 = vadd.f32 %v817_v26, %v766_v16  ;;  %v458_v29 = vpop.f32.mrb[3].mxu0  ;;  %v490_v30 = vpop.f32.mrb[3].mxu1 }
 0x152   : > { %592 = vst [vmem:[%s1287_s10] sm:$0xff] %v576_v23  ;;  %600 = vst [vmem:[%s1287_s10 + $0x40] sm:$0xff] %v584_v24  ;;  %v577_v31 = vadd.f32 %v766_v16, %v458_v29  ;;  %v585_v32 = vadd.f32 %v766_v16, %v490_v30 }
 0x153   : > { %595 = vst [vmem:[%s1287_s10 + $0x18] sm:$0xff] %v579_v27  ;;  %603 = vst [vmem:[%s1287_s10 + $0x58] sm:$0xff] %v587_v28 }
 0x154   : > { %593 = vst [vmem:[%s1287_s10 + $0x8] sm:$0xff] %v577_v31  ;;  %601 = vst [vmem:[%s1287_s10 + $0x48] sm:$0xff] %v585_v32 }
 0x156   : > { %v812_v33 = vpop.f32.mrb[4].mxu0  ;;  %v820_v34 = vpop.f32.mrb[4].mxu1 }
 0x157   : > { %v582_v35 = vadd.f32 %v812_v33, %v766_v16  ;;  %v590_v36 = vadd.f32 %v820_v34, %v766_v16  ;;  %v471_v37 = vpop.f32.mrb[5].mxu0  ;;  %v503_v38 = vpop.f32.mrb[5].mxu1 }
 0x158   : > { %v580_v39 = vadd.f32 %v766_v16, %v471_v37  ;;  %v588_v40 = vadd.f32 %v766_v16, %v503_v38  ;;  %v813_v41 = vpop.f32.mrb[6].mxu0  ;;  %v821_v42 = vpop.f32.mrb[6].mxu1 }
 0x159   : > { %598 = vst [vmem:[%s1287_s10 + $0x30] sm:$0xff] %v582_v35  ;;  %606 = vst [vmem:[%s1287_s10 + $0x70] sm:$0xff] %v590_v36  ;;  %v583_v43 = vadd.f32 %v813_v41, %v766_v16  ;;  %v591_v44 = vadd.f32 %v821_v42, %v766_v16  ;;  %v474_v45 = vpop.f32.mrb[7].mxu0  ;;  %v506_v46 = vpop.f32.mrb[7].mxu1 }
 0x15a   : > { %596 = vst [vmem:[%s1287_s10 + $0x20] sm:$0xff] %v580_v39  ;;  %604 = vst [vmem:[%s1287_s10 + $0x60] sm:$0xff] %v588_v40  ;;  %v581_v47 = vadd.f32 %v766_v16, %v474_v45  ;;  %v589_v48 = vadd.f32 %v766_v16, %v506_v46 }
 0x15b   : > { %599 = vst [vmem:[%s1287_s10 + $0x38] sm:$0xff] %v583_v43  ;;  %607 = vst [vmem:[%s1287_s10 + $0x78] sm:$0xff] %v591_v44 }
 0x15c   : > { %597 = vst [vmem:[%s1287_s10 + $0x28] sm:$0xff] %v581_v47  ;;  %605 = vst [vmem:[%s1287_s10 + $0x68] sm:$0xff] %v589_v48 }
 0x15d   : > { %1002 = shalt.err (!%p999_p5)
}
 0x15e   : > { %s1003_s29 = scalar_lea.hbm %s1304_s19, 2048  ;;  %s1007_s20 = scalar_lea.hbm %s1363_s3, 8192 }
 0x15f   : > { %p1004_p9 = scmp.ne.s32.totalorder %s1304_s19, %s1003_s29  ;;  %p1008_p3 = scmp.lt.u32.totalorder %s1304_s19, %s1363_s3 }
 0x160   : > { %p1009_p7 = scmp.lt.u32.totalorder %s1007_s20, %s1003_s29  ;;  %p1011_p4 = scmp.lt.u32.totalorder %s1003_s29, %s1304_s19 }
 0x161   : > { %p1005_p1 = pnand %p1004_p9, %p1202_p11 }
 0x162   : > { %p1010_p13 = por %p1009_p7, %p1008_p3 }
 0x163   : > { %p1006_p2 = pneg %p1005_p1 }
 0x164   : > { %p1012_p6 = por %p1011_p4, %p1010_p13 }
 0x166   : > { %p1013_p8 = pnand %p1012_p6, %p1006_p2 }
 0x168   : > { %1016 = shalt.err (!%p1013_p8)
}
 0x169   : > { %s1082_s10 = smov 128   ;;  %s1083_s11 = smov 8  }
 0x16a   : > { %844 = dma.vmem_to_hbm [thread:$0]  (%p1202_p11), %s1306_s9, 2048, %s1304_s19, %s609_s25, %s1082_s10, %s1082_s10, %s1083_s11  }
 0x16b PF: > { %p861_p12 = scmp.ge.s32.totalorder %s1075_s17, 2  ;;  %s638_s15 = sand.u32 1, %s1055_s12  }
 0x16c   : > { %p1381_p10 = scmp.ne.s32.totalorder %s1371_s23, 0  ;;  %s639_s18 = scalar_lea.sflag [#allocation5], %s638_s15 }
 0x16e   : > { %p855_p0 = pnand %p861_p12, %p1381_p10 }
 0x170   : > { %1050 = dma.done.wait (!%p855_p0), %s639_s18, 2048  }
 0x171   : > { %1052 = vsyncadd (!%p855_p0), %s639_s18, 4294965248  ;;  %s20_s17 = sadd.s32 1, %s1075_s17   ;;  %s1382_s12 = smov %s1059_s13 }
 0x172   : > { %p17_p5 = scmp.ge.s32.totalorder %s20_s17, 6   ;;  %s1383_s13 = smov %s1063_s14 }
 0x173   : > { %s1384_s14 = smov %s1211_s5  ;;  %s1385_s15 = smov %s1071_s16 }
 0x174   : > { %s1386_s16 = smov %s1388_s28  ;;  %19 = sbr.rel (!%p17_p5) target bundleno = 7 (0x7), region = 93 }
 0x17b   :  { %644 = vsyncpa [#allocation4], 1 }
 0x17c   :  { %646 = vsyncpa [#allocation4 + $0x1], 1 }
 0x17d   :  { %647 = vsyncpa [#allocation7], 1 }
 0x17e   :  { %648 = vsyncpa [#allocation5], 1 }
 0x17f   :  { %650 = vsyncpa [#allocation5 + $0x1], 1 }

</bundles_post_ra>
